<compile_context>
chip_gen: v5e
topology: v5e:2x2
jax: 0.10.0
libtpu: 0.0.40
codegen_flags: <defaults>
</compile_context>

<pallas_src>
import functools

import jax
import jax.numpy as jnp
from jax.experimental import pallas as pl
from jax.experimental.pallas import tpu as pltpu

HIDDEN1 = 128
HIDDEN2 = 64
HIDDEN2_PAD = 128  # 64-wide hidden padded to a full 128-lane vreg


def dqn_mlp_kernel(x_ref, w1_ref, b1_ref, w2_ref, b2_ref, w3_ref, b3_ref, o_ref):
    # x_ref: (TB, in) bf16; weights bf16 (in,128)/(128,128)/(128,out); biases f32.
    x = x_ref[...]
    h1 = jnp.dot(x, w1_ref[...], preferred_element_type=jnp.float32) + b1_ref[...]
    h1 = jnp.maximum(h1, 0.0).astype(jnp.bfloat16)            # ReLU in f32, feed MXU bf16
    h2 = jnp.dot(h1, w2_ref[...], preferred_element_type=jnp.float32) + b2_ref[...]
    h2 = jnp.maximum(h2, 0.0).astype(jnp.bfloat16)
    o_ref[...] = (
        jnp.dot(h2, w3_ref[...], preferred_element_type=jnp.float32) + b3_ref[...]
    ).astype(o_ref.dtype)


def prepare_params(params):
    """One-time prep: PyTorch (out,in) weights -> kernel (in,out) bf16, hidden-64
    padded to 128 lanes, biases (1,N) f32. Call once outside the training loop."""
    w1 = jnp.asarray(params["w1"]).T.astype(jnp.bfloat16)          # (in, 128)
    b1 = jnp.asarray(params["b1"]).reshape(1, -1).astype(jnp.float32)

    w2 = jnp.asarray(params["w2"]).T                                # (128, 64)
    pad = HIDDEN2_PAD - w2.shape[1]
    w2 = jnp.pad(w2, ((0, 0), (0, pad))).astype(jnp.bfloat16)       # (128, 128)
    b2 = jnp.pad(jnp.asarray(params["b2"]), (0, pad)).reshape(1, -1).astype(jnp.float32)

    w3 = jnp.asarray(params["w3"]).T                                # (64, out)
    w3 = jnp.pad(w3, ((0, pad), (0, 0))).astype(jnp.bfloat16)       # (128, out)
    b3 = jnp.asarray(params["b3"]).reshape(1, -1).astype(jnp.float32)
    return (w1, b1, w2, b2, w3, b3)


def _choose_batch_tile(batch):
    # Large batch: 1024-row tiles (multiple of 256 -> full MXU passes on v6e/v7x,
    # amortizes ~0.35us per grid step; ~<1 MiB per double-buffered x tile).
    # Small batch: a single tile rounded up to the bf16 sublane granule (16).
    if batch >= 1024:
        return 1024
    return max(16, -(-batch // 16) * 16)


def _vmem_limit_bytes(tb, in_dim, out_dim):
    # Actual footprint: double-buffered x/out tiles + resident weights + f32/bf16
    # intermediates; 2x margin + headroom for compiler-internal scratch.
    # Keeps well under v7x's 64 MiB physical VMEM while allowing big tiles.
    x_tile = tb * in_dim * 2
    o_tile = tb * out_dim * 4
    weights = (in_dim * HIDDEN1 + HIDDEN1 * HIDDEN2_PAD + HIDDEN2_PAD * out_dim) * 2
    biases = (HIDDEN1 + HIDDEN2_PAD + out_dim) * 4
    inter = tb * HIDDEN1 * (4 + 2) + tb * HIDDEN2_PAD * (4 + 2)
    total = 2 * (x_tile + o_tile) + 2 * (weights + biases) + inter
    return min(max(2 * total + (4 << 20), 12 << 20), 48 << 20)


def dqn_forward(x, prepared):
    """x: (B, input_dim) float32. prepared: output of prepare_params()."""
    w1, b1, w2, b2, w3, b3 = prepared
    batch, in_dim = x.shape
    out_dim = w3.shape[1]

    tb = _choose_batch_tile(batch)
    batch_pad = -(-batch // tb) * tb

    xb = x.astype(jnp.bfloat16)
    if batch_pad != batch:
        xb = jnp.pad(xb, ((0, batch_pad - batch), (0, 0)))

    grid = (batch_pad // tb,)

    flops = 2 * batch_pad * (in_dim * HIDDEN1 + HIDDEN1 * HIDDEN2_PAD + HIDDEN2_PAD * out_dim)
    bytes_accessed = (
        batch_pad * in_dim * 2          # x (bf16)
        + batch_pad * out_dim * 4       # out (f32)
        + (w1.size + w2.size + w3.size) * 2
        + (b1.size + b2.size + b3.size) * 4
    )

    const = lambda a: pl.BlockSpec(a.shape, lambda i: (0, 0))  # VMEM-resident across steps

    out = pl.pallas_call(
        dqn_mlp_kernel,
        out_shape=jax.ShapeDtypeStruct((batch_pad, out_dim), jnp.float32),
        grid=grid,
        in_specs=[
            pl.BlockSpec((tb, in_dim), lambda i: (i, 0)),   # x: streamed per tile
            const(w1), const(b1),
            const(w2), const(b2),
            const(w3), const(b3),
        ],
        out_specs=pl.BlockSpec((tb, out_dim), lambda i: (i, 0)),
        compiler_params=pltpu.CompilerParams(
            dimension_semantics=("parallel",),               # engages v7x's 2nd TC
            vmem_limit_bytes=_vmem_limit_bytes(tb, in_dim, out_dim),
        ),
        cost_estimate=pl.CostEstimate(
            flops=int(flops), transcendentals=0, bytes_accessed=int(bytes_accessed)
        ),
    )(xb, w1, b1, w2, b2, w3, b3)

    return out[:batch] if batch_pad != batch else out


def init_params(key, input_dim, output_dim):
    # Deterministic synthetic init in PyTorch weight convention (out, in).
    ks = jax.random.split(key, 6)

    def lin(kw, kb, fan_in, fan_out):
        bound = 1.0 / jnp.sqrt(fan_in)
        w = jax.random.uniform(kw, (fan_out, fan_in), jnp.float32, -bound, bound)
        b = jax.random.uniform(kb, (fan_out,), jnp.float32, -bound, bound)
        return w, b

    w1, b1 = lin(ks[0], ks[1], input_dim, HIDDEN1)
    w2, b2 = lin(ks[2], ks[3], HIDDEN1, HIDDEN2)
    w3, b3 = lin(ks[4], ks[5], HIDDEN2, output_dim)
    return {"w1": w1, "b1": b1, "w2": w2, "b2": b2, "w3": w3, "b3": b3}


def reference_forward(x, p):
    h1 = jnp.maximum(x @ p["w1"].T + p["b1"], 0.0)
    h2 = jnp.maximum(h1 @ p["w2"].T + p["b2"], 0.0)
    return h2 @ p["w3"].T + p["b3"]


if __name__ == "__main__":
    key = jax.random.PRNGKey(0)
    k_p, k_x = jax.random.split(key)
    input_dim, output_dim, batch = 32, 4, 8
    params = init_params(k_p, input_dim, output_dim)
    prepared = prepare_params(params)  # one-time weight transpose/pad/cast
    x = jax.random.normal(k_x, (batch, input_dim), jnp.float32)

    out = dqn_forward(x, prepared)
    out = jax.block_until_ready(out)

    ref = reference_forward(x, params)  # full-f32 reference
    assert out.shape == (batch, output_dim)
    # bf16 operands with f32 accumulation: relax tolerance vs. pure-f32 reference.
    assert jnp.allclose(out, ref, atol=5e-2, rtol=5e-2), float(jnp.max(jnp.abs(out - ref)))
    print("KERNEL_OK")
</pallas_src>

<mosaic_0001>
module attributes {stable_mosaic.version = 11 : i64} {
  func.func @dqn_mlp_kernel(%arg0: i32, %arg1: memref<16x32xbf16, #tpu.memory_space<vmem>>, %arg2: memref<32x128xbf16, #tpu.memory_space<vmem>>, %arg3: memref<1x128xf32, #tpu.memory_space<vmem>>, %arg4: memref<128x128xbf16, #tpu.memory_space<vmem>>, %arg5: memref<1x128xf32, #tpu.memory_space<vmem>>, %arg6: memref<128x4xbf16, #tpu.memory_space<vmem>>, %arg7: memref<1x4xf32, #tpu.memory_space<vmem>>, %arg8: memref<16x4xf32, #tpu.memory_space<vmem>>) attributes {dimension_semantics = [#tpu.dimension_semantics<parallel>], iteration_bounds = array<i64: 1>, scalar_prefetch = 0 : i64, scratch_operands = 0 : i64, tpu.core_type = #tpu.core_type<tc>, window_params = [{transform_indices = @transform_0, window_bounds = array<i64: 16, 32>}, {pipeline_mode = #tpu.pipeline_mode<synchronous>, transform_indices = @transform_1, window_bounds = array<i64: 32, 128>}, {pipeline_mode = #tpu.pipeline_mode<synchronous>, transform_indices = @transform_2, window_bounds = array<i64: 1, 128>}, {pipeline_mode = #tpu.pipeline_mode<synchronous>, transform_indices = @transform_3, window_bounds = array<i64: 128, 128>}, {pipeline_mode = #tpu.pipeline_mode<synchronous>, transform_indices = @transform_4, window_bounds = array<i64: 1, 128>}, {pipeline_mode = #tpu.pipeline_mode<synchronous>, transform_indices = @transform_5, window_bounds = array<i64: 128, 4>}, {pipeline_mode = #tpu.pipeline_mode<synchronous>, transform_indices = @transform_6, window_bounds = array<i64: 1, 4>}, {transform_indices = @transform_7, window_bounds = array<i64: 16, 4>}]} {
    %c0 = arith.constant 0 : index
    %c0_0 = arith.constant 0 : index
    %0 = vector.load %arg1[%c0, %c0_0] : memref<16x32xbf16, #tpu.memory_space<vmem>>, vector<16x32xbf16>
    %c0_1 = arith.constant 0 : index
    %c0_2 = arith.constant 0 : index
    %1 = vector.load %arg2[%c0_1, %c0_2] : memref<32x128xbf16, #tpu.memory_space<vmem>>, vector<32x128xbf16>
    %cst = arith.constant dense<0.000000e+00> : vector<16x128xf32>
    %2 = tpu.matmul %0, %1, %cst {dimension_numbers = #tpu.dot_dimension_numbers<[1], [0], [0], [1], [0, 0, 1, 1], [], []>} : vector<16x32xbf16>, vector<32x128xbf16>, vector<16x128xf32> -> vector<16x128xf32>
    %c0_3 = arith.constant 0 : index
    %c0_4 = arith.constant 0 : index
    %3 = vector.load %arg3[%c0_3, %c0_4] : memref<1x128xf32, #tpu.memory_space<vmem>>, vector<1x128xf32>
    %4 = vector.broadcast %3 : vector<1x128xf32> to vector<16x128xf32>
    %5 = arith.addf %2, %4 : vector<16x128xf32>
    %cst_5 = arith.constant 0.000000e+00 : f32
    %6 = vector.broadcast %cst_5 : f32 to vector<16x128xf32>
    %7 = arith.maximumf %5, %6 : vector<16x128xf32>
    %8 = arith.truncf %7 : vector<16x128xf32> to vector<16x128xbf16>
    %c0_6 = arith.constant 0 : index
    %c0_7 = arith.constant 0 : index
    %9 = vector.load %arg4[%c0_6, %c0_7] : memref<128x128xbf16, #tpu.memory_space<vmem>>, vector<128x128xbf16>
    %cst_8 = arith.constant dense<0.000000e+00> : vector<16x128xf32>
    %10 = tpu.matmul %8, %9, %cst_8 {dimension_numbers = #tpu.dot_dimension_numbers<[1], [0], [0], [1], [0, 0, 1, 1], [], []>} : vector<16x128xbf16>, vector<128x128xbf16>, vector<16x128xf32> -> vector<16x128xf32>
    %c0_9 = arith.constant 0 : index
    %c0_10 = arith.constant 0 : index
    %11 = vector.load %arg5[%c0_9, %c0_10] : memref<1x128xf32, #tpu.memory_space<vmem>>, vector<1x128xf32>
    %12 = vector.broadcast %11 : vector<1x128xf32> to vector<16x128xf32>
    %13 = arith.addf %10, %12 : vector<16x128xf32>
    %cst_11 = arith.constant 0.000000e+00 : f32
    %14 = vector.broadcast %cst_11 : f32 to vector<16x128xf32>
    %15 = arith.maximumf %13, %14 : vector<16x128xf32>
    %16 = arith.truncf %15 : vector<16x128xf32> to vector<16x128xbf16>
    %c0_12 = arith.constant 0 : index
    %c0_13 = arith.constant 0 : index
    %17 = vector.load %arg6[%c0_12, %c0_13] : memref<128x4xbf16, #tpu.memory_space<vmem>>, vector<128x4xbf16>
    %cst_14 = arith.constant dense<0.000000e+00> : vector<16x4xf32>
    %18 = tpu.matmul %16, %17, %cst_14 {dimension_numbers = #tpu.dot_dimension_numbers<[1], [0], [0], [1], [0, 0, 1, 1], [], []>} : vector<16x128xbf16>, vector<128x4xbf16>, vector<16x4xf32> -> vector<16x4xf32>
    %c0_15 = arith.constant 0 : index
    %c0_16 = arith.constant 0 : index
    %19 = vector.load %arg7[%c0_15, %c0_16] : memref<1x4xf32, #tpu.memory_space<vmem>>, vector<1x4xf32>
    %20 = vector.broadcast %19 : vector<1x4xf32> to vector<16x4xf32>
    %21 = arith.addf %18, %20 : vector<16x4xf32>
    %c0_17 = arith.constant 0 : index
    %c0_18 = arith.constant 0 : index
    %22 = vector.load %arg8[%c0_17, %c0_18] : memref<16x4xf32, #tpu.memory_space<vmem>>, vector<16x4xf32>
    tpu.vector_store %arg8[%c0_17, %c0_18], %21 {strides = array<i32>} : memref<16x4xf32, #tpu.memory_space<vmem>>, vector<16x4xf32>,
    return
  }
  func.func @transform_0(%arg0: i32) -> (i32, i32) {
    %c0_i32 = arith.constant 0 : i32
    %c0_i32_0 = arith.constant 0 : i32
    return %arg0, %c0_i32 : i32, i32
  }
  func.func @transform_1(%arg0: i32) -> (i32, i32) {
    %c0_i32 = arith.constant 0 : i32
    %c0_i32_0 = arith.constant 0 : i32
    %c0_i32_1 = arith.constant 0 : i32
    return %c0_i32, %c0_i32_0 : i32, i32
  }
  func.func @transform_2(%arg0: i32) -> (i32, i32) {
    %c0_i32 = arith.constant 0 : i32
    %c0_i32_0 = arith.constant 0 : i32
    %c0_i32_1 = arith.constant 0 : i32
    return %c0_i32, %c0_i32_0 : i32, i32
  }
  func.func @transform_3(%arg0: i32) -> (i32, i32) {
    %c0_i32 = arith.constant 0 : i32
    %c0_i32_0 = arith.constant 0 : i32
    %c0_i32_1 = arith.constant 0 : i32
    return %c0_i32, %c0_i32_0 : i32, i32
  }
  func.func @transform_4(%arg0: i32) -> (i32, i32) {
    %c0_i32 = arith.constant 0 : i32
    %c0_i32_0 = arith.constant 0 : i32
    %c0_i32_1 = arith.constant 0 : i32
    return %c0_i32, %c0_i32_0 : i32, i32
  }
  func.func @transform_5(%arg0: i32) -> (i32, i32) {
    %c0_i32 = arith.constant 0 : i32
    %c0_i32_0 = arith.constant 0 : i32
    %c0_i32_1 = arith.constant 0 : i32
    return %c0_i32, %c0_i32_0 : i32, i32
  }
  func.func @transform_6(%arg0: i32) -> (i32, i32) {
    %c0_i32 = arith.constant 0 : i32
    %c0_i32_0 = arith.constant 0 : i32
    %c0_i32_1 = arith.constant 0 : i32
    return %c0_i32, %c0_i32_0 : i32, i32
  }
  func.func @transform_7(%arg0: i32) -> (i32, i32) {
    %c0_i32 = arith.constant 0 : i32
    %c0_i32_0 = arith.constant 0 : i32
    return %arg0, %c0_i32 : i32, i32
  }
}

</mosaic_0001>

<bundles_post_ra>
// kernel: tpu_custom_call.1
= control target key start
LH: loop header
LB: loop body
LE: loop exit
PB: predicated region body
PF: predicated region fallthrough
CT: control target
= control target key end

     0   :  { %12 = vsyncpa [#allocation3], 0  ;;  %s551_s0 = inlined_call_operand.hbm [shape: bf16[16,32], index: 0, kind: input, shape index: {}]   ;;  %s552_s1 = inlined_call_operand.hbm [shape: bf16[32,128], index: 1, kind: input, shape index: {}]   ;;  %s553_s2 = inlined_call_operand.vmem [shape: f32[1,128], index: 2, kind: input, shape index: {}]   ;;  %s554_s3 = inlined_call_operand.vmem [shape: bf16[128,128], index: 3, kind: input, shape index: {}]   ;;  %s555_s4 = inlined_call_operand.vmem [shape: f32[1,128], index: 4, kind: input, shape index: {}]   ;;  %s556_s5 = inlined_call_operand.vmem [shape: bf16[128,4], index: 5, kind: input, shape index: {}]   ;;  %s557_s6 = inlined_call_operand.vmem [shape: f32[1,4], index: 6, kind: input, shape index: {}]   ;;  %s558_s7 = inlined_call_operand.vmem [shape: f32[16,4], index: 7, kind: output, shape index: {}]  }
   0x1   :  { %s18_s26 = sshll.u32 %s551_s0, 4  ;;  %s19_s26 = int_to_ptr.hbm [resolvable:$true] %s18_s26 }
   0x2   :  { %13 = vsyncpa [#allocation5], 0  ;;  %s438_s27 = smov [#allocation2]   ;;  %s31_s8 = sshll.u32 %s552_s1, 4  ;;  %s32_s8 = int_to_ptr.hbm [resolvable:$true] %s31_s8 }
   0x3   :  { %s20_s28 = sshll.u32 %s438_s27, 4  ;;  %s439_s9 = smov 64   ;;  %s21_s28 = int_to_ptr.vmem [resolvable:$true] %s20_s28 }
   0x4   :  { %s440_s10 = smov 4   ;;  %s441_s11 = smov [#allocation4]  }
   0x5   :  { %26 = dma.hbm_to_vmem [thread:$0]  %s19_s26, 128, %s21_s28, [#allocation3], %s439_s9, %s439_s9, %s440_s10  }
   0x6   :  { %s33_s12 = sshll.u32 %s441_s11, 4  ;;  %s34_s12 = int_to_ptr.vmem [resolvable:$true] %s33_s12 }
   0x7   :  { %39 = dma.hbm_to_vmem [thread:$0]  %s32_s8, 256, %s34_s12, [#allocation5], %s439_s9, %s439_s9, %s440_s10  }
   0x8   :  { %434 = dma.done.wait [#allocation3], 128  }
   0x9   :  { %435 = vsyncadd [#allocation3], 4294967168 }
   0xa   :  { %436 = dma.done.wait [#allocation5], 256  }
   0xb   :  { %437 = vsyncadd [#allocation5], 4294967040  ;;  %v362_v0 = vld [vmem:[#allocation4 + $0x8] sm:$0xff]  ;;  %v370_v1 = vld [vmem:[%s554_s3 + $0x38] sm:$0xff]  ;;  %vm86_vm0 = vcmask 261120   ;;  %vm274_vm1 = vcmask 31744  }
   0xc   :  { %96 = vmatpush.bf16.msra.mxu0 %v362_v0  ;;  %v361_v2 = vld [vmem:[#allocation4] sm:$0xff]  ;;  %175 = vmatpush.bf16.msra.mxu1 %v370_v1  ;;  %v369_v3 = vld [vmem:[%s554_s3 + $0x30] sm:$0xff]  ;;  %v360_v4 = vld [vmem:[#allocation2] sm:$0xff] }
   0xd   :  { %v368_v5 = vld [vmem:[%s554_s3 + $0x28] sm:$0xff]  ;;  %v367_v6 = vld [vmem:[%s554_s3 + $0x20] sm:$0xff]  ;;  %v366_v7 = vld [vmem:[%s554_s3 + $0x18] sm:$0xff] }
   0xe   :  { %v365_v8 = vld [vmem:[%s554_s3 + $0x10] sm:$0xff]  ;;  %v364_v9 = vld [vmem:[%s554_s3 + $0x8] sm:$0xff]  ;;  %v363_v10 = vld [vmem:[%s554_s3] sm:$0xff] }
   0xf   :  { %v378_v11 = vld [vmem:[%s556_s5 + $0x38] sm:$0xff]  ;;  %v377_v12 = vld [vmem:[%s556_s5 + $0x30] sm:$0xff]  ;;  %v376_v13 = vld [vmem:[%s556_s5 + $0x28] sm:$0xff] }
  0x10   :  { %97 = vmatpush.bf16.msra.mxu0 %v361_v2  ;;  %176 = vmatpush.bf16.msra.mxu1 %v369_v3  ;;  %v375_v14 = vld [vmem:[%s556_s5 + $0x20] sm:$0xff]  ;;  %v374_v23 = vld [vmem:[%s556_s5 + $0x18] sm:$0xff]  ;;  %v373_v24 = vld [vmem:[%s556_s5 + $0x10] sm:$0xff] }
  0x11   :  { %260 = vmatpush.bf16.msra.mxu2 %v378_v11  ;;  %v383_v16 = vld [vmem:[%s553_s2] ss:$0 sm:$0xff]  ;;  %v372_v25 = vld [vmem:[%s556_s5 + $0x8] sm:$0xff] }
  0x12   :  { %v371_v26 = vld [vmem:[%s556_s5] sm:$0xff] }
  0x13   :  { %295 = vmatmul.msk.bf16.vlgmr.msra.gmra.mxu0 %vm86_vm0, %v360_v4  ;;  %v384_v28 = vld [vmem:[%s555_s4] ss:$0 sm:$0xff] }
  0x14   :  { %177 = vmatpush.bf16.msra.mxu1 %v368_v5  ;;  %v385_v35 = vld [vmem:[%s557_s6] ss:$0 sm:$0xff] }
  0x15   :  { %261 = vmatpush.bf16.msra.mxu2 %v377_v12 }
  0x18   :  { %178 = vmatpush.bf16.msra.mxu1 %v367_v6 }
  0x19   :  { %262 = vmatpush.bf16.msra.mxu2 %v376_v13 }
  0x1c   :  { %179 = vmatpush.bf16.msra.mxu1 %v366_v7 }
  0x1d   :  { %263 = vmatpush.bf16.msra.mxu2 %v375_v14 }
  0x20   :  { %180 = vmatpush.bf16.msra.mxu1 %v365_v8 }
  0x21   :  { %264 = vmatpush.bf16.msra.mxu2 %v374_v23 }
  0x24   :  { %181 = vmatpush.bf16.msra.mxu1 %v364_v9 }
  0x25   :  { %265 = vmatpush.bf16.msra.mxu2 %v373_v24 }
  0x28   :  { %182 = vmatpush.bf16.msra.mxu1 %v363_v10 }
  0x29   :  { %266 = vmatpush.bf16.msra.mxu2 %v372_v25 }
  0x2d   :  { %267 = vmatpush.bf16.msra.mxu2 %v371_v26 }
  0x90   :  { %v99_v15 = vpop.f32.mrf.mxu0 }
  0x91   :  { %v100_v17 = vadd.f32 %v383_v16, %v99_v15 }
  0x93   :  { %v104_v20 = vmax.f32 %v100_v17, 0.0 }
  0x98   :  { %v101_v18 = vpop.f32.mrf.mxu0 }
  0x99   :  { %v102_v19 = vadd.f32 %v383_v16, %v101_v18 }
  0x9b   :  { %v105_v21 = vmax.f32 %v102_v19, 0.0 }
  0x9d   :  { %v106_v22 = vpack.c.bf16 %v105_v21, %v104_v20 }
  0x9f   :  { %183 = vmatmul.bf16.vlgmr.msra.gmra.mxu1 %v106_v22 }
 0x11c   :  { %v184_v27 = vpop.f32.mrf.mxu1 }
 0x11d   :  { %v185_v29 = vadd.f32 %v384_v28, %v184_v27 }
 0x11f   :  { %v189_v32 = vmax.f32 %v185_v29, 0.0 }
 0x124   :  { %v186_v30 = vpop.f32.mrf.mxu1 }
 0x125   :  { %v187_v31 = vadd.f32 %v384_v28, %v186_v30 }
 0x127   :  { %v190_v33 = vmax.f32 %v187_v31, 0.0 }
 0x129   :  { %v191_v34 = vpack.c.bf16 %v190_v33, %v189_v32 }
 0x12b   :  { %268 = vmatmul.bf16.vlgmr.msra.gmra.mxu2 %v191_v34 }
 0x1ae   :  { %v269_v36 = vpop.f32.mrf.mxu2 }
 0x1af   :  { %v270_v37 = vadd.f32 %v385_v35, %v269_v36 }
 0x1b1   :  { %275 = vst.msk [vmem:[%s558_s7] sm:$0xff] %vm274_vm1, %v270_v37 }
 0x1b6   :  { %v271_v38 = vpop.f32.mrf.mxu2 }
 0x1b7   :  { %v272_v39 = vadd.f32 %v385_v35, %v271_v38 }
 0x1b9   :  { %276 = vst.msk [vmem:[%s558_s7 + $0x8] sm:$0xff] %vm274_vm1, %v272_v39 }
 0x1ba   :  { %281 = vsyncpa [#allocation3], 1 }
 0x1bb   :  { %282 = vsyncpa [#allocation5], 1 }

</bundles_post_ra>
